<compile_context>
chip_gen: v5e
topology: v5e:2x2
jax: 0.10.0
libtpu: 0.0.40
codegen_flags: <defaults>
</compile_context>

<pallas_src>
import jax
import jax.numpy as jnp
from jax.experimental import pallas as pl
from jax.experimental.pallas import tpu as pltpu


def _round_up(x, m):
    return (x + m - 1) // m * m


def _contrastive_kernel(x1_ref, x2_ref, wb_ref, bb_ref, wf_ref, bf_ref,
                        e1_ref, e2_ref, out_ref):
    """One grid step processes tile_b rows of x1 and x2.

    x1_ref, x2_ref : (tile_b, D)  bf16 activations (batch-tiled, pipelined)
    wb_ref         : (D, H)       bf16 base Linear weight (VMEM-resident)
    bb_ref         : (1, H)       f32  base Linear bias
    wf_ref         : (H, C)       bf16 head Linear weight (VMEM-resident)
    bf_ref         : (1, C)       f32  head Linear bias
    e1_ref, e2_ref : (tile_b, H)  f32 embeddings of x1 / x2
    out_ref        : (tile_b, C)  f32 logits of relu(emb(x1))
    """
    wb = wb_ref[...]
    bb = bb_ref[...]

    # Base model on both inputs; MXU in bf16, accumulate + bias in f32.
    e1 = jnp.dot(x1_ref[...], wb, preferred_element_type=jnp.float32) + bb
    e2 = jnp.dot(x2_ref[...], wb, preferred_element_type=jnp.float32) + bb
    e1_ref[...] = e1.astype(e1_ref.dtype)
    e2_ref[...] = e2.astype(e2_ref.dtype)

    # Classification head on x1's embedding only (base model is deterministic,
    # so reusing emb(x1) matches base_model(x1) being called again).
    h = jnp.maximum(e1, 0.0).astype(wf_ref.dtype)
    out = jnp.dot(h, wf_ref[...], preferred_element_type=jnp.float32) + bf_ref[...]
    out_ref[...] = out.astype(out_ref.dtype)


def _step_vmem_bytes(tile_b, d, h, c):
    # Double-buffered activation tiles (bf16 in, f32 out) + single-buffered
    # resident weights/biases.
    acts = 2 * (2 * tile_b * d * 2) + 2 * (2 * tile_b * h * 4 + tile_b * c * 4)
    weights = (d * h + h * c) * 2 + (h + c) * 4
    return acts + weights


@jax.jit
def contrastive_forward(x1, x2, w_base, b_base, w_fc, b_fc):
    """Returns (embedding1, embedding2, output) like ContrastiveWrapper.forward.

    Weights are stored pre-transposed as (in_features, out_features), so the
    kernel computes y = x @ W + b (== PyTorch's x @ W.T + b).
    """
    B, D = x1.shape
    H = w_base.shape[1]
    C = w_fc.shape[1]
    f32, bf16 = jnp.float32, jnp.bfloat16

    # --- batch tiling: >= 2 grid steps (v7x megacore), padding < 8 rows/tile,
    # --- shrink tile_b if the per-step working set would bust VMEM.
    budget = 28 * 1024 * 1024
    n_tiles = max(2, pl.cdiv(B, 256))
    tile_b = _round_up(pl.cdiv(B, n_tiles), 8)
    while tile_b > 8 and _step_vmem_bytes(tile_b, D, H, C) > budget:
        n_tiles *= 2
        tile_b = _round_up(pl.cdiv(B, n_tiles), 8)
    Bp = n_tiles * tile_b

    # --- operands: bf16 matmul inputs, f32 biases; only the batch is padded.
    x1b = x1.astype(bf16)
    x2b = x2.astype(bf16)
    if Bp != B:
        x1b = jnp.pad(x1b, ((0, Bp - B), (0, 0)))
        x2b = jnp.pad(x2b, ((0, Bp - B), (0, 0)))
    wb = w_base.astype(bf16)
    wf = w_fc.astype(bf16)
    bb = b_base.astype(f32).reshape(1, H)
    bf = b_fc.astype(f32).reshape(1, C)

    cost = pl.CostEstimate(
        flops=2 * (2 * Bp) * D * H + 2 * Bp * H * C,
        transcendentals=0,
        bytes_accessed=(2 * Bp * D * 2 + (D * H + H * C) * 2 + (H + C) * 4
                        + (2 * Bp * H + Bp * C) * 4),
    )

    cp_kwargs = dict(dimension_semantics=("parallel",))
    need = _step_vmem_bytes(tile_b, D, H, C)
    if need > 16 * 1024 * 1024:
        cp_kwargs["vmem_limit_bytes"] = min(int(need * 1.5), 64 * 1024 * 1024)

    # Constant index_map + single buffer: weights stay resident in VMEM.
    def resident(shape):
        return pl.BlockSpec(shape, lambda i: (0,) * len(shape),
                            pipeline_mode=pl.Buffered(1))

    e1_pad, e2_pad, out_pad = pl.pallas_call(
        _contrastive_kernel,
        out_shape=(
            jax.ShapeDtypeStruct((Bp, H), f32),   # embedding1
            jax.ShapeDtypeStruct((Bp, H), f32),   # embedding2
            jax.ShapeDtypeStruct((Bp, C), f32),   # logits
        ),
        grid=(n_tiles,),
        in_specs=[
            pl.BlockSpec((tile_b, D), lambda i: (i, 0)),   # x1 tile
            pl.BlockSpec((tile_b, D), lambda i: (i, 0)),   # x2 tile
            resident((D, H)),                              # w_base
            resident((1, H)),                              # b_base
            resident((H, C)),                              # w_fc
            resident((1, C)),                              # b_fc
        ],
        out_specs=(
            pl.BlockSpec((tile_b, H), lambda i: (i, 0)),
            pl.BlockSpec((tile_b, H), lambda i: (i, 0)),
            pl.BlockSpec((tile_b, C), lambda i: (i, 0)),
        ),
        compiler_params=pltpu.CompilerParams(**cp_kwargs),
        cost_estimate=cost,
    )(x1b, x2b, wb, bb, wf, bf)

    if Bp != B:
        return e1_pad[:B], e2_pad[:B], out_pad[:B]
    return e1_pad, e2_pad, out_pad


if __name__ == "__main__":
    # Small, deterministic synthetic setup.
    B = 4        # batch
    D_IN = 32    # base_model input features
    H = 16       # contrastive_layer_size
    C = 8        # num_classes

    key = jax.random.PRNGKey(0)
    k1, k2, k3, k4, k5, k6 = jax.random.split(key, 6)

    x1 = jax.random.normal(k1, (B, D_IN), dtype=jnp.float32)
    x2 = jax.random.normal(k2, (B, D_IN), dtype=jnp.float32)

    # base model parameters (Linear D_IN -> H), stored as (in, out)
    w_base = jax.random.normal(k3, (D_IN, H), dtype=jnp.float32) * 0.1
    b_base = jax.random.normal(k4, (H,), dtype=jnp.float32) * 0.1
    # classification head (Linear H -> C), stored as (in, out)
    w_fc = jax.random.normal(k5, (H, C), dtype=jnp.float32) * 0.1
    b_fc = jax.random.normal(k6, (C,), dtype=jnp.float32) * 0.1

    emb1, emb2, out = contrastive_forward(x1, x2, w_base, b_base, w_fc, b_fc)
    jax.block_until_ready((emb1, emb2, out))
    assert emb1.shape == (B, H) and emb2.shape == (B, H) and out.shape == (B, C)

    # Reference 1: same bf16-rounded operands, f32 accumulation (tight check).
    f32, bf16 = jnp.float32, jnp.bfloat16
    x1r = x1.astype(bf16).astype(f32)
    x2r = x2.astype(bf16).astype(f32)
    wbr = w_base.astype(bf16).astype(f32)
    wfr = w_fc.astype(bf16).astype(f32)
    ref_e1 = x1r @ wbr + b_base
    ref_e2 = x2r @ wbr + b_base
    ref_o = jnp.maximum(ref_e1, 0.0).astype(bf16).astype(f32) @ wfr + b_fc
    assert jnp.allclose(emb1, ref_e1, atol=1e-4, rtol=1e-4)
    assert jnp.allclose(emb2, ref_e2, atol=1e-4, rtol=1e-4)
    assert jnp.allclose(out, ref_o, atol=1e-4, rtol=1e-4)

    # Reference 2: pure f32 math (loose check -> bf16 MXU operands only add
    # small rounding noise, semantics are preserved).
    ref_e1f = x1 @ w_base + b_base
    ref_e2f = x2 @ w_base + b_base
    ref_of = jnp.maximum(ref_e1f, 0.0) @ w_fc + b_fc
    assert jnp.allclose(emb1, ref_e1f, atol=3e-2, rtol=3e-2)
    assert jnp.allclose(emb2, ref_e2f, atol=3e-2, rtol=3e-2)
    assert jnp.allclose(out, ref_of, atol=3e-2, rtol=3e-2)

    print("KERNEL_OK")
</pallas_src>

<mosaic_0001>
module attributes {stable_mosaic.version = 11 : i64} {
  func.func @_contrastive_kernel(%arg0: i32, %arg1: memref<8x32xbf16, #tpu.memory_space<vmem>>, %arg2: memref<8x32xbf16, #tpu.memory_space<vmem>>, %arg3: memref<32x16xbf16, #tpu.memory_space<vmem>>, %arg4: memref<1x16xf32, #tpu.memory_space<vmem>>, %arg5: memref<16x8xbf16, #tpu.memory_space<vmem>>, %arg6: memref<1x8xf32, #tpu.memory_space<vmem>>, %arg7: memref<8x16xf32, #tpu.memory_space<vmem>>, %arg8: memref<8x16xf32, #tpu.memory_space<vmem>>, %arg9: memref<8x8xf32, #tpu.memory_space<vmem>>) attributes {dimension_semantics = [#tpu.dimension_semantics<parallel>], iteration_bounds = array<i64: 2>, scalar_prefetch = 0 : i64, scratch_operands = 0 : i64, tpu.core_type = #tpu.core_type<tc>, window_params = [{transform_indices = @transform_0, window_bounds = array<i64: 8, 32>}, {transform_indices = @transform_1, window_bounds = array<i64: 8, 32>}, {pipeline_mode = #tpu.pipeline_mode<synchronous>, transform_indices = @transform_2, window_bounds = array<i64: 32, 16>}, {pipeline_mode = #tpu.pipeline_mode<synchronous>, transform_indices = @transform_3, window_bounds = array<i64: 1, 16>}, {pipeline_mode = #tpu.pipeline_mode<synchronous>, transform_indices = @transform_4, window_bounds = array<i64: 16, 8>}, {pipeline_mode = #tpu.pipeline_mode<synchronous>, transform_indices = @transform_5, window_bounds = array<i64: 1, 8>}, {transform_indices = @transform_6, window_bounds = array<i64: 8, 16>}, {transform_indices = @transform_7, window_bounds = array<i64: 8, 16>}, {transform_indices = @transform_8, window_bounds = array<i64: 8, 8>}]} {
    %c0 = arith.constant 0 : index
    %c0_0 = arith.constant 0 : index
    %0 = vector.load %arg3[%c0, %c0_0] : memref<32x16xbf16, #tpu.memory_space<vmem>>, vector<32x16xbf16>
    %c0_1 = arith.constant 0 : index
    %c0_2 = arith.constant 0 : index
    %1 = vector.load %arg4[%c0_1, %c0_2] : memref<1x16xf32, #tpu.memory_space<vmem>>, vector<1x16xf32>
    %c0_3 = arith.constant 0 : index
    %c0_4 = arith.constant 0 : index
    %2 = vector.load %arg1[%c0_3, %c0_4] : memref<8x32xbf16, #tpu.memory_space<vmem>>, vector<8x32xbf16>
    %cst = arith.constant dense<0.000000e+00> : vector<8x16xf32>
    %3 = tpu.matmul %2, %0, %cst {dimension_numbers = #tpu.dot_dimension_numbers<[1], [0], [0], [1], [0, 0, 1, 1], [], []>} : vector<8x32xbf16>, vector<32x16xbf16>, vector<8x16xf32> -> vector<8x16xf32>
    %4 = vector.broadcast %1 : vector<1x16xf32> to vector<8x16xf32>
    %5 = arith.addf %3, %4 : vector<8x16xf32>
    %c0_5 = arith.constant 0 : index
    %c0_6 = arith.constant 0 : index
    %6 = vector.load %arg2[%c0_5, %c0_6] : memref<8x32xbf16, #tpu.memory_space<vmem>>, vector<8x32xbf16>
    %cst_7 = arith.constant dense<0.000000e+00> : vector<8x16xf32>
    %7 = tpu.matmul %6, %0, %cst_7 {dimension_numbers = #tpu.dot_dimension_numbers<[1], [0], [0], [1], [0, 0, 1, 1], [], []>} : vector<8x32xbf16>, vector<32x16xbf16>, vector<8x16xf32> -> vector<8x16xf32>
    %8 = vector.broadcast %1 : vector<1x16xf32> to vector<8x16xf32>
    %9 = arith.addf %7, %8 : vector<8x16xf32>
    %c0_8 = arith.constant 0 : index
    %c0_9 = arith.constant 0 : index
    %10 = vector.load %arg7[%c0_8, %c0_9] : memref<8x16xf32, #tpu.memory_space<vmem>>, vector<8x16xf32>
    tpu.vector_store %arg7[%c0_8, %c0_9], %5 {strides = array<i32>} : memref<8x16xf32, #tpu.memory_space<vmem>>, vector<8x16xf32>,
    %c0_10 = arith.constant 0 : index
    %c0_11 = arith.constant 0 : index
    %11 = vector.load %arg8[%c0_10, %c0_11] : memref<8x16xf32, #tpu.memory_space<vmem>>, vector<8x16xf32>
    tpu.vector_store %arg8[%c0_10, %c0_11], %9 {strides = array<i32>} : memref<8x16xf32, #tpu.memory_space<vmem>>, vector<8x16xf32>,
    %cst_12 = arith.constant 0.000000e+00 : f32
    %12 = vector.broadcast %cst_12 : f32 to vector<8x16xf32>
    %13 = arith.maximumf %5, %12 : vector<8x16xf32>
    %14 = arith.truncf %13 : vector<8x16xf32> to vector<8x16xbf16>
    %c0_13 = arith.constant 0 : index
    %c0_14 = arith.constant 0 : index
    %15 = vector.load %arg5[%c0_13, %c0_14] : memref<16x8xbf16, #tpu.memory_space<vmem>>, vector<16x8xbf16>
    %cst_15 = arith.constant dense<0.000000e+00> : vector<8x8xf32>
    %16 = tpu.matmul %14, %15, %cst_15 {dimension_numbers = #tpu.dot_dimension_numbers<[1], [0], [0], [1], [0, 0, 1, 1], [], []>} : vector<8x16xbf16>, vector<16x8xbf16>, vector<8x8xf32> -> vector<8x8xf32>
    %c0_16 = arith.constant 0 : index
    %c0_17 = arith.constant 0 : index
    %17 = vector.load %arg6[%c0_16, %c0_17] : memref<1x8xf32, #tpu.memory_space<vmem>>, vector<1x8xf32>
    %18 = vector.broadcast %17 : vector<1x8xf32> to vector<8x8xf32>
    %19 = arith.addf %16, %18 : vector<8x8xf32>
    %c0_18 = arith.constant 0 : index
    %c0_19 = arith.constant 0 : index
    %20 = vector.load %arg9[%c0_18, %c0_19] : memref<8x8xf32, #tpu.memory_space<vmem>>, vector<8x8xf32>
    tpu.vector_store %arg9[%c0_18, %c0_19], %19 {strides = array<i32>} : memref<8x8xf32, #tpu.memory_space<vmem>>, vector<8x8xf32>,
    return
  }
  func.func @transform_0(%arg0: i32) -> (i32, i32) {
    %c0_i32 = arith.constant 0 : i32
    %c0_i32_0 = arith.constant 0 : i32
    return %arg0, %c0_i32 : i32, i32
  }
  func.func @transform_1(%arg0: i32) -> (i32, i32) {
    %c0_i32 = arith.constant 0 : i32
    %c0_i32_0 = arith.constant 0 : i32
    return %arg0, %c0_i32 : i32, i32
  }
  func.func @transform_2(%arg0: i32) -> (i32, i32) {
    %c0_i32 = arith.constant 0 : i32
    %c0_i32_0 = arith.constant 0 : i32
    %c0_i32_1 = arith.constant 0 : i32
    return %c0_i32, %c0_i32_0 : i32, i32
  }
  func.func @transform_3(%arg0: i32) -> (i32, i32) {
    %c0_i32 = arith.constant 0 : i32
    %c0_i32_0 = arith.constant 0 : i32
    %c0_i32_1 = arith.constant 0 : i32
    return %c0_i32, %c0_i32_0 : i32, i32
  }
  func.func @transform_4(%arg0: i32) -> (i32, i32) {
    %c0_i32 = arith.constant 0 : i32
    %c0_i32_0 = arith.constant 0 : i32
    %c0_i32_1 = arith.constant 0 : i32
    return %c0_i32, %c0_i32_0 : i32, i32
  }
  func.func @transform_5(%arg0: i32) -> (i32, i32) {
    %c0_i32 = arith.constant 0 : i32
    %c0_i32_0 = arith.constant 0 : i32
    %c0_i32_1 = arith.constant 0 : i32
    return %c0_i32, %c0_i32_0 : i32, i32
  }
  func.func @transform_6(%arg0: i32) -> (i32, i32) {
    %c0_i32 = arith.constant 0 : i32
    %c0_i32_0 = arith.constant 0 : i32
    return %arg0, %c0_i32 : i32, i32
  }
  func.func @transform_7(%arg0: i32) -> (i32, i32) {
    %c0_i32 = arith.constant 0 : i32
    %c0_i32_0 = arith.constant 0 : i32
    return %arg0, %c0_i32 : i32, i32
  }
  func.func @transform_8(%arg0: i32) -> (i32, i32) {
    %c0_i32 = arith.constant 0 : i32
    %c0_i32_0 = arith.constant 0 : i32
    return %arg0, %c0_i32 : i32, i32
  }
}

</mosaic_0001>

<bundles_post_ra>
// kernel: contrastive_forward.1
= control target key start
LH: loop header
LB: loop body
LE: loop exit
PB: predicated region body
PF: predicated region fallthrough
CT: control target
= control target key end

     0   :  { %s650_s27 = smov 0   ;;  %s691_s0 = inlined_call_operand.vmem [shape: bf16[16,32], index: 0, kind: input, shape index: {}]   ;;  %s692_s1 = inlined_call_operand.vmem [shape: bf16[16,32], index: 1, kind: input, shape index: {}]   ;;  %s693_s2 = inlined_call_operand.vmem [shape: bf16[32,16], index: 2, kind: input, shape index: {}]   ;;  %s694_s3 = inlined_call_operand.vmem [shape: f32[1,16], index: 3, kind: input, shape index: {}]   ;;  %s695_s4 = inlined_call_operand.vmem [shape: bf16[16,8], index: 4, kind: input, shape index: {}]   ;;  %s696_s5 = inlined_call_operand.vmem [shape: f32[1,8], index: 5, kind: input, shape index: {}]   ;;  %s697_s6 = inlined_call_operand.vmem [shape: f32[16,16], index: 6, kind: output, shape index: {0}]   ;;  %s698_s7 = inlined_call_operand.vmem [shape: f32[16,16], index: 7, kind: output, shape index: {1}]   ;;  %s699_s8 = inlined_call_operand.vmem [shape: f32[16,8], index: 8, kind: output, shape index: {2}]  }
   0x1 LB: > { %s557_s28 = sadd.s32 4294967295, %s603_s27   ;;  %p561_p0 = scmp.ge.s32.totalorder %s603_s27, 1  ;;  %s603_s27 = sphi %s650_s27, %s19_s27  }
   0x2   : > { %p275_p1 = scmp.lt.s32.totalorder %s603_s27, 3 }
   0x4   : > { %p276_p2 = pnand %p561_p0, %p275_p1 }
   0x5   : > { %p319_p3 = scmp.lt.s32.totalorder (!%p276_p2), %s557_s28, 1 }
   0x6   : > { %279 = sbr.rel (%p276_p2) target bundleno = 291 (0x123), region = 44 }
   0xb   : > { %v585_v0 = vld [vmem:[%s693_s2 + $0x8] sm:$0xff]  ;;  %v584_v1 = vld [vmem:[%s693_s2] sm:$0xff]  ;;  %s701_s28 = smov (!%p319_p3, %s557_s28), 1  ;;  %vm361_vm0 = vcmask 261120   ;;  %vm395_vm1 = vcmask 130048   ;;  %vm428_vm2 = vcmask 64512  }
   0xc   : > { %371 = vmatpush.bf16.msra.mxu0 %v585_v0  ;;  %388 = vmatpush.bf16.msra.mxu1 %v585_v0  ;;  %s562_s11 = sshll.u32 %s701_s28, 2  ;;  %v586_v3 = vld [vmem:[%s695_s4] sm:$0xff]  ;;  %s564_s20 = sshll.u32 %s701_s28, 3 }
   0xd   : > { %s322_s14 = scalar_lea.vmem %s691_s0, %s562_s11  ;;  %s326_s17 = scalar_lea.vmem %s692_s1, %s562_s11  ;;  %422 = vmatpush.bf16.msra.mxu2 %v586_v3  ;;  %v595_v5 = vld [vmem:[%s694_s3] ss:$0 sm:$0xff] }
   0xe   : > { %v345_v2 = vld [vmem:[%s322_s14] sm:$0xf]  ;;  %s330_s25 = scalar_lea.vmem %s697_s6, %s564_s20  ;;  %s334_s28 = scalar_lea.vmem %s698_s7, %s564_s20 }
   0xf   : > { %v378_v4 = vld [vmem:[%s326_s17] sm:$0xf]  ;;  %s338_s12 = scalar_lea.vmem %s699_s8, %s564_s20 }
  0x10   : > { %372 = vmatpush.bf16.msra.mxu0 %v584_v1  ;;  %389 = vmatpush.bf16.msra.mxu1 %v584_v1  ;;  %v596_v14 = vld [vmem:[%s696_s5] ss:$0 sm:$0xff] }
  0x13   : > { %575 = vmatmul.msk.bf16.vlgmr.msra.gmra.mxu0 %vm361_vm0, %v345_v2  ;;  %576 = vmatmul.msk.bf16.vlgmr.msra.gmra.mxu1 %vm361_vm0, %v378_v4 }
  0x90   : > { %v374_v6 = vpop.f32.mrf.mxu0  ;;  %v391_v11 = vpop.f32.mrf.mxu1 }
  0x91   : > { %v375_v7 = vadd.f32 %v595_v5, %v374_v6  ;;  %v392_v12 = vadd.f32 %v595_v5, %v391_v11 }
  0x93   : > { %v398_v8 = vmax.f32 %v375_v7, 0.0  ;;  %396 = vst.msk [vmem:[%s330_s25] sm:$0xff] %vm395_vm1, %v375_v7 }
  0x94   : > { %397 = vst.msk [vmem:[%s334_s28] sm:$0xff] %vm395_vm1, %v392_v12 }
  0x95   : > { %v399_v9 = vpack.c.bf16 %v398_v8, %v398_v8 }
  0x97   : > { %581 = vmatmul.msk.bf16.vlgmr.msra.gmra.mxu2 %vm395_vm1, %v399_v9 }
  0x98   : > { %v376_v10 = vpop.f32.mrf.mxu0  ;;  %v393_v13 = vpop.f32.mrf.mxu1 }
 0x11a   : > { %v424_v15 = vpop.f32.mrf.mxu2 }
 0x11b   : > { %v425_v16 = vadd.f32 %v596_v14, %v424_v15 }
 0x11d   : > { %429 = vst.msk [vmem:[%s338_s12] sm:$0xff] %vm428_vm2, %v425_v16 }
 0x122   : > { %v426_v17 = vpop.f32.mrf.mxu2 }
 0x123 PF: > { %s19_s27 = sadd.s32 1, %s603_s27  }
 0x124   : > { %p16_p4 = scmp.ge.s32.totalorder %s19_s27, 4  }
 0x126   :  { %18 = sbr.rel (!%p16_p4) target bundleno = 1 (0x1), region = 101 }

</bundles_post_ra>
